<compile_context>
chip_gen: v7x
topology: tpu7x:2x2x1
jax: 0.10.0
libtpu: 0.0.40
codegen_flags: <defaults>
</compile_context>

<pallas_src>
import jax
import jax.numpy as jnp
from jax.experimental import pallas as pl
from jax.experimental.pallas import tpu as pltpu

K_IN = 100    # linear1 in/out features
N_OUT = 10    # linear2 out features


def _round_up(n, m):
    return ((n + m - 1) // m) * m


def _mlp_kernel(x_ref, w1_ref, b1_ref, w2_ref, b2_ref, o_ref):
    # x_ref : (tb, 100) f32        w1_ref: (100, 100) bf16 (or f32)
    # b1_ref: (1, 100)  f32        w2_ref: (100, 10)  bf16 (or f32)
    # b2_ref: (1, 10)   f32        o_ref : (tb, 10)   f32
    x = x_ref[...]                                   # f32, read once from HBM
    xm = x.astype(w1_ref.dtype)                      # MXU operand cast only

    # linear1 (MXU, f32 accumulate) + bias + ReLU, all f32.
    h = jnp.dot(xm, w1_ref[...], preferred_element_type=jnp.float32) + b1_ref[...]
    h = jnp.maximum(h, 0.0)

    # residual add on the ORIGINAL f32 x (no bf16 round-trip of the residual).
    g = h + x

    # linear2 (MXU, f32 accumulate) + bias; narrow (tb, 10) store.
    out = jnp.dot(g.astype(w2_ref.dtype), w2_ref[...],
                  preferred_element_type=jnp.float32) + b2_ref[...]
    o_ref[...] = out.astype(o_ref.dtype)


def prepare_params(w1, b1, w2, b2, matmul_dtype=jnp.bfloat16):
    """One-time preprocessing: transpose PyTorch-layout weights to (in, out),
    cast matmul operands to `matmul_dtype`, reshape biases to (1, N).

    w1: (100,100), b1: (100,), w2: (10,100), b2: (10,)  (PyTorch layout).
    """
    w1_t = jnp.asarray(w1, jnp.float32).T.astype(matmul_dtype)        # (100,100)
    w2_t = jnp.asarray(w2, jnp.float32).T.astype(matmul_dtype)        # (100,10)
    b1_r = jnp.asarray(b1, jnp.float32).reshape(1, K_IN)              # (1,100)
    b2_r = jnp.asarray(b2, jnp.float32).reshape(1, N_OUT)             # (1,10)
    return w1_t, b1_r, w2_t, b2_r


def simple_module_forward(x, prepared, *, block_b=2048):
    """x: (B, 100) float32.  prepared: output of prepare_params().
    Returns (B, 10) float32."""
    w1_t, b1_r, w2_t, b2_r = prepared
    x = jnp.asarray(x, jnp.float32)
    B = x.shape[0]

    # Batch tile: multiple of 8 sublanes, capped at block_b; when the batch is
    # big enough, force >=2 grid steps so v7x's two TensorCores both get work.
    b_round = _round_up(B, 8)
    tb = min(block_b, b_round)
    if b_round >= 16:
        tb = min(tb, _round_up(pl.cdiv(b_round, 2), 8))
    grid_n = pl.cdiv(b_round, tb)
    b_pad = grid_n * tb

    x_in = x if b_pad == B else jnp.pad(x, ((0, b_pad - B), (0, 0)))

    itm_w = jnp.dtype(w1_t.dtype).itemsize
    flops = 2 * b_pad * (K_IN * K_IN + K_IN * N_OUT)
    bytes_accessed = (b_pad * K_IN * 4                       # x read (f32)
                      + K_IN * K_IN * itm_w                  # w1
                      + K_IN * N_OUT * itm_w                 # w2
                      + (K_IN + N_OUT) * 4                   # biases
                      + b_pad * N_OUT * 4)                   # narrow output write

    out = pl.pallas_call(
        _mlp_kernel,
        out_shape=jax.ShapeDtypeStruct((b_pad, N_OUT), jnp.float32),
        grid=(grid_n,),
        in_specs=[
            pl.BlockSpec((tb, K_IN), lambda i: (i, 0)),        # x: blocked over batch
            pl.BlockSpec((K_IN, K_IN), lambda i: (0, 0)),      # w1: VMEM-resident
            pl.BlockSpec((1, K_IN), lambda i: (0, 0)),         # b1
            pl.BlockSpec((K_IN, N_OUT), lambda i: (0, 0)),     # w2
            pl.BlockSpec((1, N_OUT), lambda i: (0, 0)),        # b2
        ],
        out_specs=pl.BlockSpec((tb, N_OUT), lambda i: (i, 0)),
        compiler_params=pltpu.CompilerParams(
            dimension_semantics=("parallel",),   # batch shards across TCs on v7x
        ),
        cost_estimate=pl.CostEstimate(
            flops=flops, transcendentals=0, bytes_accessed=bytes_accessed),
    )(x_in, w1_t, b1_r, w2_t, b2_r)

    return out[:B] if b_pad != B else out


def _init_params(key):
    """PyTorch-Linear-shaped params: W1 (100,100), b1 (100,), W2 (10,100), b2 (10,)."""
    k1, k2, k3, k4 = jax.random.split(key, 4)
    bound = 1.0 / jnp.sqrt(100.0)
    w1 = jax.random.uniform(k1, (100, 100), jnp.float32, -bound, bound)
    b1 = jax.random.uniform(k2, (100,), jnp.float32, -bound, bound)
    w2 = jax.random.uniform(k3, (10, 100), jnp.float32, -bound, bound)
    b2 = jax.random.uniform(k4, (10,), jnp.float32, -bound, bound)
    return w1, b1, w2, b2


def _reference(x, w1, b1, w2, b2):
    h = x @ w1.T + b1
    h = jnp.maximum(h, 0.0)
    h = h + x
    return h @ w2.T + b2


if __name__ == "__main__":
    key = jax.random.PRNGKey(0)
    kx, kp = jax.random.split(key)

    B = 8
    x = jax.random.normal(kx, (B, 100), jnp.float32)
    w1, b1, w2, b2 = _init_params(kp)

    prepared = prepare_params(w1, b1, w2, b2, matmul_dtype=jnp.bfloat16)
    out = simple_module_forward(x, prepared)
    out = jax.block_until_ready(out)

    ref = _reference(x, w1, b1, w2, b2)
    assert out.shape == (B, N_OUT), out.shape
    # bf16 MXU operands with f32 accumulation (residual kept in f32) ->
    # loosened tolerance vs the pure-f32 reference.
    assert jnp.allclose(out, ref, atol=5e-2, rtol=5e-2), "mismatch vs reference"

    print("KERNEL_OK")
</pallas_src>

<mosaic_0001>
module attributes {stable_mosaic.version = 11 : i64} {
  func.func @_mlp_kernel(%arg0: i32, %arg1: memref<8x100xf32, #tpu.memory_space<vmem>>, %arg2: memref<100x100xbf16, #tpu.memory_space<vmem>>, %arg3: memref<1x100xf32, #tpu.memory_space<vmem>>, %arg4: memref<100x10xbf16, #tpu.memory_space<vmem>>, %arg5: memref<1x10xf32, #tpu.memory_space<vmem>>, %arg6: memref<8x10xf32, #tpu.memory_space<vmem>>) attributes {dimension_semantics = [#tpu.dimension_semantics<parallel>], iteration_bounds = array<i64: 1>, scalar_prefetch = 0 : i64, scratch_operands = 0 : i64, tpu.core_type = #tpu.core_type<tc>, window_params = [{transform_indices = @transform_0, window_bounds = array<i64: 8, 100>}, {pipeline_mode = #tpu.pipeline_mode<synchronous>, transform_indices = @transform_1, window_bounds = array<i64: 100, 100>}, {pipeline_mode = #tpu.pipeline_mode<synchronous>, transform_indices = @transform_2, window_bounds = array<i64: 1, 100>}, {pipeline_mode = #tpu.pipeline_mode<synchronous>, transform_indices = @transform_3, window_bounds = array<i64: 100, 10>}, {pipeline_mode = #tpu.pipeline_mode<synchronous>, transform_indices = @transform_4, window_bounds = array<i64: 1, 10>}, {transform_indices = @transform_5, window_bounds = array<i64: 8, 10>}]} {
    %c0 = arith.constant 0 : index
    %c0_0 = arith.constant 0 : index
    %0 = vector.load %arg1[%c0, %c0_0] : memref<8x100xf32, #tpu.memory_space<vmem>>, vector<8x100xf32>
    %1 = arith.truncf %0 : vector<8x100xf32> to vector<8x100xbf16>
    %c0_1 = arith.constant 0 : index
    %c0_2 = arith.constant 0 : index
    %2 = vector.load %arg2[%c0_1, %c0_2] : memref<100x100xbf16, #tpu.memory_space<vmem>>, vector<100x100xbf16>
    %cst = arith.constant dense<0.000000e+00> : vector<8x100xf32>
    %3 = tpu.matmul %1, %2, %cst {dimension_numbers = #tpu.dot_dimension_numbers<[1], [0], [0], [1], [0, 0, 1, 1], [], []>} : vector<8x100xbf16>, vector<100x100xbf16>, vector<8x100xf32> -> vector<8x100xf32>
    %c0_3 = arith.constant 0 : index
    %c0_4 = arith.constant 0 : index
    %4 = vector.load %arg3[%c0_3, %c0_4] : memref<1x100xf32, #tpu.memory_space<vmem>>, vector<1x100xf32>
    %5 = vector.broadcast %4 : vector<1x100xf32> to vector<8x100xf32>
    %6 = arith.addf %3, %5 : vector<8x100xf32>
    %cst_5 = arith.constant 0.000000e+00 : f32
    %7 = vector.broadcast %cst_5 : f32 to vector<8x100xf32>
    %8 = arith.maximumf %6, %7 : vector<8x100xf32>
    %9 = arith.addf %8, %0 : vector<8x100xf32>
    %10 = arith.truncf %9 : vector<8x100xf32> to vector<8x100xbf16>
    %c0_6 = arith.constant 0 : index
    %c0_7 = arith.constant 0 : index
    %11 = vector.load %arg4[%c0_6, %c0_7] : memref<100x10xbf16, #tpu.memory_space<vmem>>, vector<100x10xbf16>
    %cst_8 = arith.constant dense<0.000000e+00> : vector<8x10xf32>
    %12 = tpu.matmul %10, %11, %cst_8 {dimension_numbers = #tpu.dot_dimension_numbers<[1], [0], [0], [1], [0, 0, 1, 1], [], []>} : vector<8x100xbf16>, vector<100x10xbf16>, vector<8x10xf32> -> vector<8x10xf32>
    %c0_9 = arith.constant 0 : index
    %c0_10 = arith.constant 0 : index
    %13 = vector.load %arg5[%c0_9, %c0_10] : memref<1x10xf32, #tpu.memory_space<vmem>>, vector<1x10xf32>
    %14 = vector.broadcast %13 : vector<1x10xf32> to vector<8x10xf32>
    %15 = arith.addf %12, %14 : vector<8x10xf32>
    %c0_11 = arith.constant 0 : index
    %c0_12 = arith.constant 0 : index
    %16 = vector.load %arg6[%c0_11, %c0_12] : memref<8x10xf32, #tpu.memory_space<vmem>>, vector<8x10xf32>
    tpu.vector_store %arg6[%c0_11, %c0_12], %15 {strides = array<i32>} : memref<8x10xf32, #tpu.memory_space<vmem>>, vector<8x10xf32>,
    return
  }
  func.func @transform_0(%arg0: i32) -> (i32, i32) {
    %c0_i32 = arith.constant 0 : i32
    %c0_i32_0 = arith.constant 0 : i32
    return %arg0, %c0_i32 : i32, i32
  }
  func.func @transform_1(%arg0: i32) -> (i32, i32) {
    %c0_i32 = arith.constant 0 : i32
    %c0_i32_0 = arith.constant 0 : i32
    %c0_i32_1 = arith.constant 0 : i32
    return %c0_i32, %c0_i32_0 : i32, i32
  }
  func.func @transform_2(%arg0: i32) -> (i32, i32) {
    %c0_i32 = arith.constant 0 : i32
    %c0_i32_0 = arith.constant 0 : i32
    %c0_i32_1 = arith.constant 0 : i32
    return %c0_i32, %c0_i32_0 : i32, i32
  }
  func.func @transform_3(%arg0: i32) -> (i32, i32) {
    %c0_i32 = arith.constant 0 : i32
    %c0_i32_0 = arith.constant 0 : i32
    %c0_i32_1 = arith.constant 0 : i32
    return %c0_i32, %c0_i32_0 : i32, i32
  }
  func.func @transform_4(%arg0: i32) -> (i32, i32) {
    %c0_i32 = arith.constant 0 : i32
    %c0_i32_0 = arith.constant 0 : i32
    %c0_i32_1 = arith.constant 0 : i32
    return %c0_i32, %c0_i32_0 : i32, i32
  }
  func.func @transform_5(%arg0: i32) -> (i32, i32) {
    %c0_i32 = arith.constant 0 : i32
    %c0_i32_0 = arith.constant 0 : i32
    return %arg0, %c0_i32 : i32, i32
  }
}

</mosaic_0001>

<bundles_post_ra>
// kernel: tpu_custom_call.1
= control target key start
LH: loop header
LB: loop body
LE: loop exit
PB: predicated region body
PF: predicated region fallthrough
CT: control target
= control target key end

     0   :  { %v366_v1 = vmov 0.0   ;;  %vm367_vm0 = vmmov 0   ;;  %s466_s0 = inlined_call_operand.vmem [shape: f32[8,100], index: 0, kind: input, shape index: {}]   ;;  %s467_s1 = inlined_call_operand.vmem [shape: bf16[100,100], index: 1, kind: input, shape index: {}]   ;;  %s468_s2 = inlined_call_operand.vmem [shape: f32[1,100], index: 2, kind: input, shape index: {}]   ;;  %s469_s3 = inlined_call_operand.vmem [shape: bf16[100,10], index: 3, kind: input, shape index: {}]   ;;  %s470_s4 = inlined_call_operand.vmem [shape: f32[1,10], index: 4, kind: input, shape index: {}]   ;;  %s471_s5 = inlined_call_operand.hbm [shape: f32[8,10], index: 5, kind: output, shape index: {}]  }
   0x1   :  { %v328_v0 = vld [vmem:[%s467_s1] sm:$0xff]   ;;  %289 = vmatprep.subr.bf16.mxu0 %v366_v1  ;;  %307 = vmatprep.subr.bf16.mxu1 %v366_v1  ;;  %v329_v2 = vld [vmem:[%s467_s1 + $0x8] sm:$0xff]   ;;  %v330_v3 = vld [vmem:[%s467_s1 + $0x10] sm:$0xff]  }
   0x2   :  { %290 = vmatpush3.bf16.msra.mxu0 %v328_v0  ;;  %303 = vmatprep.mubr.msk.bf16.mxu0 %vm367_vm0, %v366_v1  ;;  %v335_v4 = vld [vmem:[%s469_s3] sm:$0xff]   ;;  %v336_v5 = vld [vmem:[%s469_s3 + $0x8] sm:$0xff]   ;;  %v331_v6 = vld [vmem:[%s467_s1 + $0x18] sm:$0xff]  }
   0x3   :  { %291 = vmatprep.subr.bf16.mxu0 %v366_v1  ;;  %321 = vmatprep.mubr.msk.bf16.mxu1 %vm367_vm0, %v366_v1  ;;  %v337_v7 = vld [vmem:[%s469_s3 + $0x10] sm:$0xff]  }
   0x4   :  { %308 = vmatpush3.bf16.msra.mxu1 %v335_v4 }
   0x5   :  { %309 = vmatprep.subr.bf16.mxu1 %v366_v1 }
   0x6   :  { %292 = vmatpush3.bf16.msra.mxu0 %v329_v2 }
   0x7   :  { %293 = vmatprep.subr.bf16.mxu0 %v366_v1 }
   0x8   :  { %310 = vmatpush3.bf16.msra.mxu1 %v336_v5 }
   0xa   :  { %294 = vmatpush3.bf16.msra.mxu0 %v330_v3 }
   0xb   :  { %295 = vmatprep.subr.bf16.mxu0 %v366_v1 }
   0xc   :  { %10 = vsyncpa [#allocation3], 0  ;;  %v332_v8 = vld [vmem:[%s467_s1 + $0x20] sm:$0xff]   ;;  %311 = vmatprep.subr.bf16.mxu1 %v366_v1  ;;  %v338_v9 = vld [vmem:[%s469_s3 + $0x18] sm:$0xff]   ;;  %vm87_vm1 = vcmask 1041408   ;;  %vm83_vm2 = vcmask 818176  }
   0xd   :  { %312 = vmatpush3.bf16.msra.mxu1 %v337_v7  ;;  %v333_v10 = vld [vmem:[%s467_s1 + $0x28] sm:$0xff]   ;;  %v334_v11 = vld [vmem:[%s467_s1 + $0x30] ss:$0 sps:$4 sm:$0x33]   ;;  %v339_v12 = vld [vmem:[%s469_s3 + $0x20] sm:$0xff]   ;;  %vm239_vm3 = vcmask 80896  }
   0xe   :  { %296 = vmatpush3.bf16.msra.mxu0 %v331_v6  ;;  %313 = vmatprep.subr.bf16.mxu1 %v366_v1  ;;  %v22_v13 = vld [vmem:[%s466_s0] sm:$0xff]  ;;  %v89_v14 = vsel %vm87_vm1, %v334_v11, 0  ;;  %v340_v16 = vld [vmem:[%s469_s3 + $0x28] sm:$0xff]   ;;  %v341_v17 = vld [vmem:[%s469_s3 + $0x30] ss:$0 sps:$4 sm:$0x33]  }
   0xf   :  { %297 = vmatprep.subr.bf16.mxu0 %v366_v1  ;;  %v23_v15 = vpack.c.bf16 %v22_v13, %v22_v13  ;;  %v197_v18 = vsel %vm87_vm1, %v341_v17, 0  ;;  %v255_v19 = vld [vmem:[%s468_s2] ss:$0 sm:$0xff]  ;;  %s368_s3 = smov [#allocation2]  }
  0x10   :  { %v264_v28 = vld [vmem:[%s470_s4] ss:$0 sm:$0xff]  ;;  %s247_s25 = sshll.u32 %s368_s3, 4  ;;  %s248_s25 = int_to_ptr.vmem [resolvable:$true] %s247_s25 }
  0x11   :  { %314 = vmatpush3.bf16.msra.mxu1 %v338_v9  ;;  %s342_s2 = scalar_lea.vmem %s248_s25, 128  ;;  %p347_p1 = scmp.lt.s32.totalorder %s248_s25, %s248_s25 }
  0x12   :  { %298 = vmatpush3.bf16.msra.mxu0 %v332_v8  ;;  %315 = vmatprep.subr.bf16.mxu1 %v366_v1  ;;  %p343_p0 = scmp.ne.s32.totalorder %s248_s25, %s342_s2  ;;  %p348_p2 = scmp.lt.s32.totalorder %s342_s2, %s342_s2 }
  0x13   :  { %299 = vmatprep.subr.bf16.mxu0 %v366_v1 }
  0x14   :  { %p349_p3 = por %p348_p2, %p347_p1 }
  0x15   :  { %316 = vmatpush3.bf16.msra.mxu1 %v339_v12 }
  0x16   :  { %300 = vmatpush3.bf16.msra.mxu0 %v333_v10  ;;  %317 = vmatprep.subr.bf16.mxu1 %v366_v1  ;;  %p350_p4 = pnand %p349_p3, %p343_p0 }
  0x17   :  { %301 = vmatprep.subr.bf16.mxu0 %v366_v1 }
  0x19   :  { %318 = vmatpush3.bf16.msra.mxu1 %v340_v16 }
  0x1a   :  { %302 = vmatpush3.bf16.msra.mxu0 %v89_v14  ;;  %319 = vmatprep.subr.bf16.mxu1 %v366_v1 }
  0x1d   :  { %304 = vmatmul.mubr.msk.bf16.vlgmr.msra.gmra.mrb[0].mxu0 %vm83_vm2, %v23_v15  ;;  %320 = vmatpush3.bf16.msra.mxu1 %v197_v18 }
  0xf0   :  { %v125_v20 = vpop.f32.mrb[0].mxu0 }
  0xf1   :  { %v126_v21 = vadd.f32 %v255_v19, %v125_v20  ;;  %v305_v22 = vpop.f32.mrb[1].mxu0 }
  0xf2   :  { %v128_v23 = vpop.f32.mrb[2].mxu0 }
  0xf3   :  { %v131_v24 = vmax.f32 %v126_v21, 0.0  ;;  %v306_v25 = vpop.f32.mrb[3].mxu0 }
  0xf5   :  { %v132_v26 = vadd.f32 %v131_v24, %v22_v13 }
  0xf7   :  { %v133_v27 = vpack.c.bf16 %v132_v26, %v132_v26 }
  0xf9   :  { %322 = vmatmul.mubr.msk.bf16.vlgmr.msra.gmra.mrb[0].mxu1 %vm83_vm2, %v133_v27 }
 0x1cc   :  { %v233_v29 = vpop.f32.mrb[0].mxu1 }
 0x1cd   :  { %v234_v30 = vadd.f32 %v264_v28, %v233_v29  ;;  %v323_v31 = vpop.f32.mrb[1].mxu1 }
 0x1ce   :  { %v236_v32 = vpop.f32.mrb[2].mxu1 }
 0x1cf   :  { %v324_v33 = vpop.f32.mrb[3].mxu1  ;;  %240 = vst.msk [vmem:[#allocation2] sm:$0xff] %vm239_vm3, %v234_v30 }
 0x1d0   :  { %353 = shalt.err (!%p350_p4)
}
 0x1d1   :  { %s354_s4 = scalar_lea.hbm %s471_s5, 128 }
 0x1d2   :  { %p355_p5 = scmp.ne.s32.totalorder %s471_s5, %s354_s4  ;;  %p358_p6 = scmp.lt.u32.totalorder %s354_s4, %s471_s5 }
 0x1d4   :  { %p360_p7 = pnand %p358_p6, %p355_p5 }
 0x1d6   :  { %363 = shalt.err (!%p360_p7)
}
 0x1d7   :  { %250 = dma.vmem_to_hbm [thread:$0]  %s248_s25, 128, %s471_s5, [#allocation3]  }
 0x1d8   :  { %364 = dma.done.wait [#allocation3], 128  }
 0x1d9   :  { %365 = vsyncadd [#allocation3], 4294967168 }
 0x1da   :  { %254 = vsyncpa [#allocation3], 1 }

</bundles_post_ra>
